<compile_context>
chip_gen: v6e
topology: v6e:2x2x1
jax: 0.10.0
libtpu: 0.0.40
codegen_flags: <defaults>
</compile_context>

<pallas_src>
import jax
import jax.numpy as jnp
from jax.experimental import pallas as pl
from jax.experimental.pallas import tpu as pltpu


def prank_kernel(ctx_id_ref, tgt_ids_ref,                 # scalar prefetch (SMEM)
                 in_embed_ref, in_bias_ref, labels_ref,   # VMEM inputs
                 embed_out_ref, bias_out_ref, acc_ref):   # VMEM outputs
    emb = in_embed_ref[...]            # (W, D) f32   embedding table
    biases = in_bias_ref[...]          # (W, K) f32   bias table
    labels = labels_ref[...]           # (B, 1) int32

    W, D = emb.shape
    K = biases.shape[1]
    B = labels.shape[0]

    ctx_id = ctx_id_ref[0]             # dynamic scalar from SMEM

    # ---- gather context row of in_embed / in_bias (masked sublane reduce) ----
    row_ids = jax.lax.broadcasted_iota(jnp.int32, (W, 1), 0)                   # (W, 1)
    is_ctx = row_ids == ctx_id                                                 # (W, 1)
    ctx = jnp.sum(jnp.where(is_ctx, emb, 0.0), axis=0, keepdims=True)          # (1, D)
    ctx_bias = jnp.sum(jnp.where(is_ctx, biases, 0.0), axis=0, keepdims=True)  # (1, K)

    # ---- gather the B target rows (exact one-hot select + reduce, unrolled) ----
    batch_ids = jax.lax.broadcasted_iota(jnp.int32, (B, 1), 0)                 # (B, 1)
    tgt = jnp.zeros((B, D), jnp.float32)
    for b in range(B):                                                         # B static
        row_b = jnp.sum(jnp.where(row_ids == tgt_ids_ref[b], emb, 0.0),
                        axis=0, keepdims=True)                                 # (1, D)
        tgt = tgt + jnp.where(batch_ids == b, row_b, 0.0)                      # place @ sublane b

    # ---- dots = context . target  (VPU multiply + lane reduce, no MXU) ----
    dots = jnp.sum(tgt * ctx, axis=1, keepdims=True)                           # (B, 1)
    dots_bias = dots - ctx_bias                                                # (B, K)

    # ---- predicted labels: first j with dots_bias <= 0 -> j+1, else K+1 ----
    j_idx = jax.lax.broadcasted_iota(jnp.int32, (B, K), 1)
    nonpos = dots_bias <= 0.0
    flag = jnp.min(jnp.where(nonpos, j_idx, K), axis=1, keepdims=True)         # (B, 1)
    p_labels = flag + 1

    # ---- accuracy (lane-dense (1,128) store) ----
    correct = jnp.sum((p_labels == labels).astype(jnp.float32))
    acc_ref[...] = jnp.broadcast_to(correct / jnp.float32(B), acc_ref.shape)

    # ---- yt / judge / tau (all f32, single fused VPU sequence) ----
    yt = jnp.where(j_idx < labels, 1.0, -1.0)                                  # (B, K)
    judge = dots_bias * yt
    tau = jnp.where(judge > 0.0, 0.0, labels.astype(jnp.float32))              # (B, K)

    bias_update = jnp.mean(tau, axis=0, keepdims=True)                         # (1, K)
    row_sum = jnp.sum(tau, axis=1, keepdims=True)                              # (B, 1)
    weight_update = jnp.mean(row_sum * tgt, axis=0, keepdims=True)             # (1, D)

    # ---- fused scatter-update of the context row (full-width table stores) ----
    embed_out_ref[...] = emb + jnp.where(is_ctx, weight_update, 0.0)
    bias_out_ref[...] = biases - jnp.where(is_ctx, bias_update, 0.0)


def _prank_forward_impl(in_embed, in_bias, context_id, target_ids, labels):
    """Reproduces PRank.forward: returns (acc, updated_in_embed, updated_in_bias)."""
    W, D = in_embed.shape
    K = in_bias.shape[1]
    ctx_id = context_id.reshape(-1).astype(jnp.int32)         # (1,)
    tgt_ids = target_ids.reshape(-1).astype(jnp.int32)        # (B,)
    lbl_2d = labels.reshape(-1, 1).astype(jnp.int32)          # (B, 1)
    B = lbl_2d.shape[0]

    grid_spec = pltpu.PrefetchScalarGridSpec(
        num_scalar_prefetch=2,
        grid=(1,),
        in_specs=[
            pl.BlockSpec((W, D), lambda i, c, t: (0, 0)),     # in_embed (whole, VMEM)
            pl.BlockSpec((W, K), lambda i, c, t: (0, 0)),     # in_bias  (whole, VMEM)
            pl.BlockSpec((B, 1), lambda i, c, t: (0, 0)),     # labels
        ],
        out_specs=(
            pl.BlockSpec((W, D), lambda i, c, t: (0, 0)),     # updated in_embed
            pl.BlockSpec((W, K), lambda i, c, t: (0, 0)),     # updated in_bias
            pl.BlockSpec((1, 128), lambda i, c, t: (0, 0)),   # acc slab (lane-dense)
        ),
    )

    new_embed, new_bias, acc_slab = pl.pallas_call(
        prank_kernel,
        out_shape=(
            jax.ShapeDtypeStruct((W, D), jnp.float32),
            jax.ShapeDtypeStruct((W, K), jnp.float32),
            jax.ShapeDtypeStruct((1, 128), jnp.float32),
        ),
        grid_spec=grid_spec,
        # flattened operand order: ctx_id(0), tgt_ids(1), in_embed(2), in_bias(3), labels(4)
        input_output_aliases={2: 0, 3: 1},
        compiler_params=pltpu.CompilerParams(
            dimension_semantics=("arbitrary",)),
    )(ctx_id, tgt_ids, in_embed.astype(jnp.float32),
      in_bias.astype(jnp.float32), lbl_2d)

    return acc_slab[0, 0], new_embed, new_bias


prank_forward = jax.jit(_prank_forward_impl)


def prank_forward_ref(in_embed, in_bias, context_id, target_ids, labels):
    """Pure-JAX reference mirroring the PyTorch code."""
    tgt_ids = target_ids.reshape(-1).astype(jnp.int32)
    lbl = labels.reshape(-1).astype(jnp.int32)
    K = in_bias.shape[1]
    B = tgt_ids.shape[0]

    ctx = in_embed[context_id]                               # (1, D)
    tgt_bias = in_bias[context_id]                           # (1, K)
    tgt = in_embed[tgt_ids]                                  # (B, D)
    dots = (ctx @ tgt.T).reshape(B, 1)                       # (B, 1)
    dots_bias = dots - tgt_bias                              # (B, K)

    j_idx = jnp.arange(K)[None, :]
    nonpos = dots_bias <= 0.0
    flag = jnp.min(jnp.where(nonpos, j_idx, K), axis=1)
    p_labels = flag + 1
    acc = jnp.mean((p_labels == lbl).astype(jnp.float32))

    yt = jnp.where(j_idx < lbl[:, None], 1.0, -1.0)
    judge = dots_bias * yt
    tau = jnp.where(judge > 0.0, 0.0, lbl[:, None].astype(jnp.float32))
    bias_update = jnp.mean(tau, axis=0, keepdims=True)
    weight_update = jnp.mean(jnp.sum(tau, axis=1, keepdims=True) * tgt,
                             axis=0, keepdims=True)
    new_in_embed = in_embed.at[context_id].add(weight_update)
    new_in_bias = in_bias.at[context_id].add(-bias_update)
    return acc, new_in_embed, new_in_bias


if __name__ == "__main__":
    # Small shapes consistent with the module:
    #   word_number=16, embed_size=32, bias_number=5 (-> K = 4), batch_size=8
    word_number, embed_size, bias_number, batch_size = 16, 32, 5, 8
    K = bias_number - 1

    key = jax.random.PRNGKey(0)
    k_emb, k_tgt, k_lbl, k_ctx = jax.random.split(key, 4)

    # deterministic parameter init (mirrors torch.rand / torch.zeros in __init__)
    in_embed = jax.random.uniform(k_emb, (word_number, embed_size), jnp.float32)
    in_bias = jnp.zeros((word_number, K), jnp.float32)

    context_id = jax.random.randint(k_ctx, (1,), 0, word_number, jnp.int32)
    target_ids = jax.random.randint(k_tgt, (1, batch_size), 0, word_number, jnp.int32)
    labels = jax.random.randint(k_lbl, (1, batch_size), 1, K + 2, jnp.int32)  # in [1, K+1]

    acc, new_emb, new_bias = prank_forward(in_embed, in_bias,
                                           context_id, target_ids, labels)
    jax.block_until_ready((acc, new_emb, new_bias))

    # verify against pure-JAX reference
    acc_r, new_emb_r, new_bias_r = prank_forward_ref(in_embed, in_bias,
                                                     context_id, target_ids, labels)
    assert jnp.allclose(acc, acc_r, atol=1e-6), (acc, acc_r)
    assert jnp.allclose(new_emb, new_emb_r, atol=1e-5)
    assert jnp.allclose(new_bias, new_bias_r, atol=1e-5)

    print("KERNEL_OK")
</pallas_src>

<mosaic_0001>
module attributes {stable_mosaic.version = 11 : i64} {
  func.func @prank_kernel(%arg0: i32, %arg1: memref<1xi32, #tpu.memory_space<smem>>, %arg2: memref<8xi32, #tpu.memory_space<smem>>, %arg3: memref<16x32xf32, #tpu.memory_space<vmem>>, %arg4: memref<16x4xf32, #tpu.memory_space<vmem>>, %arg5: memref<8x1xi32, #tpu.memory_space<vmem>>, %arg6: memref<16x32xf32, #tpu.memory_space<vmem>>, %arg7: memref<16x4xf32, #tpu.memory_space<vmem>>, %arg8: memref<1x128xf32, #tpu.memory_space<vmem>>) attributes {dimension_semantics = [#tpu.dimension_semantics<arbitrary>], iteration_bounds = array<i64: 1>, scalar_prefetch = 2 : i64, scratch_operands = 0 : i64, tpu.core_type = #tpu.core_type<tc>, window_params = [{pipeline_mode = #tpu.pipeline_mode<synchronous>, transform_indices = @transform_0, window_bounds = array<i64: 16, 32>}, {pipeline_mode = #tpu.pipeline_mode<synchronous>, transform_indices = @transform_1, window_bounds = array<i64: 16, 4>}, {pipeline_mode = #tpu.pipeline_mode<synchronous>, transform_indices = @transform_2, window_bounds = array<i64: 8, 1>}, {pipeline_mode = #tpu.pipeline_mode<synchronous>, transform_indices = @transform_3, window_bounds = array<i64: 16, 32>}, {pipeline_mode = #tpu.pipeline_mode<synchronous>, transform_indices = @transform_4, window_bounds = array<i64: 16, 4>}, {pipeline_mode = #tpu.pipeline_mode<synchronous>, transform_indices = @transform_5, window_bounds = array<i64: 1, 128>}]} {
    %c0 = arith.constant 0 : index
    %c0_0 = arith.constant 0 : index
    %0 = vector.load %arg3[%c0, %c0_0] : memref<16x32xf32, #tpu.memory_space<vmem>>, vector<16x32xf32>
    %c0_1 = arith.constant 0 : index
    %c0_2 = arith.constant 0 : index
    %1 = vector.load %arg4[%c0_1, %c0_2] : memref<16x4xf32, #tpu.memory_space<vmem>>, vector<16x4xf32>
    %c0_3 = arith.constant 0 : index
    %c0_4 = arith.constant 0 : index
    %2 = vector.load %arg5[%c0_3, %c0_4] : memref<8x1xi32, #tpu.memory_space<vmem>>, vector<8x1xi32>
    %c0_5 = arith.constant 0 : index
    %3 = memref.load %arg1[%c0_5] : memref<1xi32, #tpu.memory_space<smem>>
    %4 = tpu.iota {dimensions = array<i32: 0>} : vector<16x1xi32>
    %5 = vector.broadcast %3 : i32 to vector<16x1xi32>
    %6 = arith.cmpi eq, %4, %5 : vector<16x1xi32>
    %cst = arith.constant 0.000000e+00 : f32
    %7 = vector.shape_cast %6 : vector<16x1xi1> to vector<16x1xi1>
    %8 = vector.broadcast %7 : vector<16x1xi1> to vector<16x32xi1>
    %9 = vector.broadcast %cst : f32 to vector<16x32xf32>
    %10 = arith.select %8, %0, %9 : vector<16x32xi1>, vector<16x32xf32>
    %cst_6 = arith.constant dense<0.000000e+00> : vector<32xf32>
    %11 = vector.multi_reduction <add>, %10, %cst_6 [0] : vector<16x32xf32> to vector<32xf32>
    %12 = vector.shape_cast %11 : vector<32xf32> to vector<1x32xf32>
    %cst_7 = arith.constant 0.000000e+00 : f32
    %13 = vector.shape_cast %6 : vector<16x1xi1> to vector<16x1xi1>
    %14 = vector.broadcast %13 : vector<16x1xi1> to vector<16x4xi1>
    %15 = vector.broadcast %cst_7 : f32 to vector<16x4xf32>
    %16 = arith.select %14, %1, %15 : vector<16x4xi1>, vector<16x4xf32>
    %cst_8 = arith.constant dense<0.000000e+00> : vector<4xf32>
    %17 = vector.multi_reduction <add>, %16, %cst_8 [0] : vector<16x4xf32> to vector<4xf32>
    %18 = vector.shape_cast %17 : vector<4xf32> to vector<1x4xf32>
    %19 = tpu.iota {dimensions = array<i32: 0>} : vector<8x1xi32>
    %cst_9 = arith.constant 0.000000e+00 : f32
    %20 = vector.broadcast %cst_9 : f32 to vector<8x32xf32>
    %c0_10 = arith.constant 0 : index
    %21 = memref.load %arg2[%c0_10] : memref<8xi32, #tpu.memory_space<smem>>
    %22 = vector.broadcast %21 : i32 to vector<16x1xi32>
    %23 = arith.cmpi eq, %4, %22 : vector<16x1xi32>
    %cst_11 = arith.constant 0.000000e+00 : f32
    %24 = vector.shape_cast %23 : vector<16x1xi1> to vector<16x1xi1>
    %25 = vector.broadcast %24 : vector<16x1xi1> to vector<16x32xi1>
    %26 = vector.broadcast %cst_11 : f32 to vector<16x32xf32>
    %27 = arith.select %25, %0, %26 : vector<16x32xi1>, vector<16x32xf32>
    %cst_12 = arith.constant dense<0.000000e+00> : vector<32xf32>
    %28 = vector.multi_reduction <add>, %27, %cst_12 [0] : vector<16x32xf32> to vector<32xf32>
    %29 = vector.shape_cast %28 : vector<32xf32> to vector<1x32xf32>
    %c0_i32 = arith.constant 0 : i32
    %30 = vector.broadcast %c0_i32 : i32 to vector<8x1xi32>
    %31 = arith.cmpi eq, %19, %30 : vector<8x1xi32>
    %cst_13 = arith.constant 0.000000e+00 : f32
    %32 = vector.shape_cast %31 : vector<8x1xi1> to vector<8x1xi1>
    %33 = vector.broadcast %32 : vector<8x1xi1> to vector<8x32xi1>
    %34 = vector.shape_cast %29 : vector<1x32xf32> to vector<1x32xf32>
    %35 = vector.broadcast %34 : vector<1x32xf32> to vector<8x32xf32>
    %36 = vector.broadcast %cst_13 : f32 to vector<8x32xf32>
    %37 = arith.select %33, %35, %36 : vector<8x32xi1>, vector<8x32xf32>
    %38 = arith.addf %20, %37 : vector<8x32xf32>
    %c1 = arith.constant 1 : index
    %39 = memref.load %arg2[%c1] : memref<8xi32, #tpu.memory_space<smem>>
    %40 = vector.broadcast %39 : i32 to vector<16x1xi32>
    %41 = arith.cmpi eq, %4, %40 : vector<16x1xi32>
    %cst_14 = arith.constant 0.000000e+00 : f32
    %42 = vector.shape_cast %41 : vector<16x1xi1> to vector<16x1xi1>
    %43 = vector.broadcast %42 : vector<16x1xi1> to vector<16x32xi1>
    %44 = vector.broadcast %cst_14 : f32 to vector<16x32xf32>
    %45 = arith.select %43, %0, %44 : vector<16x32xi1>, vector<16x32xf32>
    %cst_15 = arith.constant dense<0.000000e+00> : vector<32xf32>
    %46 = vector.multi_reduction <add>, %45, %cst_15 [0] : vector<16x32xf32> to vector<32xf32>
    %47 = vector.shape_cast %46 : vector<32xf32> to vector<1x32xf32>
    %c1_i32 = arith.constant 1 : i32
    %48 = vector.broadcast %c1_i32 : i32 to vector<8x1xi32>
    %49 = arith.cmpi eq, %19, %48 : vector<8x1xi32>
    %cst_16 = arith.constant 0.000000e+00 : f32
    %50 = vector.shape_cast %49 : vector<8x1xi1> to vector<8x1xi1>
    %51 = vector.broadcast %50 : vector<8x1xi1> to vector<8x32xi1>
    %52 = vector.shape_cast %47 : vector<1x32xf32> to vector<1x32xf32>
    %53 = vector.broadcast %52 : vector<1x32xf32> to vector<8x32xf32>
    %54 = vector.broadcast %cst_16 : f32 to vector<8x32xf32>
    %55 = arith.select %51, %53, %54 : vector<8x32xi1>, vector<8x32xf32>
    %56 = arith.addf %38, %55 : vector<8x32xf32>
    %c2 = arith.constant 2 : index
    %57 = memref.load %arg2[%c2] : memref<8xi32, #tpu.memory_space<smem>>
    %58 = vector.broadcast %57 : i32 to vector<16x1xi32>
    %59 = arith.cmpi eq, %4, %58 : vector<16x1xi32>
    %cst_17 = arith.constant 0.000000e+00 : f32
    %60 = vector.shape_cast %59 : vector<16x1xi1> to vector<16x1xi1>
    %61 = vector.broadcast %60 : vector<16x1xi1> to vector<16x32xi1>
    %62 = vector.broadcast %cst_17 : f32 to vector<16x32xf32>
    %63 = arith.select %61, %0, %62 : vector<16x32xi1>, vector<16x32xf32>
    %cst_18 = arith.constant dense<0.000000e+00> : vector<32xf32>
    %64 = vector.multi_reduction <add>, %63, %cst_18 [0] : vector<16x32xf32> to vector<32xf32>
    %65 = vector.shape_cast %64 : vector<32xf32> to vector<1x32xf32>
    %c2_i32 = arith.constant 2 : i32
    %66 = vector.broadcast %c2_i32 : i32 to vector<8x1xi32>
    %67 = arith.cmpi eq, %19, %66 : vector<8x1xi32>
    %cst_19 = arith.constant 0.000000e+00 : f32
    %68 = vector.shape_cast %67 : vector<8x1xi1> to vector<8x1xi1>
    %69 = vector.broadcast %68 : vector<8x1xi1> to vector<8x32xi1>
    %70 = vector.shape_cast %65 : vector<1x32xf32> to vector<1x32xf32>
    %71 = vector.broadcast %70 : vector<1x32xf32> to vector<8x32xf32>
    %72 = vector.broadcast %cst_19 : f32 to vector<8x32xf32>
    %73 = arith.select %69, %71, %72 : vector<8x32xi1>, vector<8x32xf32>
    %74 = arith.addf %56, %73 : vector<8x32xf32>
    %c3 = arith.constant 3 : index
    %75 = memref.load %arg2[%c3] : memref<8xi32, #tpu.memory_space<smem>>
    %76 = vector.broadcast %75 : i32 to vector<16x1xi32>
    %77 = arith.cmpi eq, %4, %76 : vector<16x1xi32>
    %cst_20 = arith.constant 0.000000e+00 : f32
    %78 = vector.shape_cast %77 : vector<16x1xi1> to vector<16x1xi1>
    %79 = vector.broadcast %78 : vector<16x1xi1> to vector<16x32xi1>
    %80 = vector.broadcast %cst_20 : f32 to vector<16x32xf32>
    %81 = arith.select %79, %0, %80 : vector<16x32xi1>, vector<16x32xf32>
    %cst_21 = arith.constant dense<0.000000e+00> : vector<32xf32>
    %82 = vector.multi_reduction <add>, %81, %cst_21 [0] : vector<16x32xf32> to vector<32xf32>
    %83 = vector.shape_cast %82 : vector<32xf32> to vector<1x32xf32>
    %c3_i32 = arith.constant 3 : i32
    %84 = vector.broadcast %c3_i32 : i32 to vector<8x1xi32>
    %85 = arith.cmpi eq, %19, %84 : vector<8x1xi32>
    %cst_22 = arith.constant 0.000000e+00 : f32
    %86 = vector.shape_cast %85 : vector<8x1xi1> to vector<8x1xi1>
    %87 = vector.broadcast %86 : vector<8x1xi1> to vector<8x32xi1>
    %88 = vector.shape_cast %83 : vector<1x32xf32> to vector<1x32xf32>
    %89 = vector.broadcast %88 : vector<1x32xf32> to vector<8x32xf32>
    %90 = vector.broadcast %cst_22 : f32 to vector<8x32xf32>
    %91 = arith.select %87, %89, %90 : vector<8x32xi1>, vector<8x32xf32>
    %92 = arith.addf %74, %91 : vector<8x32xf32>
    %c4 = arith.constant 4 : index
    %93 = memref.load %arg2[%c4] : memref<8xi32, #tpu.memory_space<smem>>
    %94 = vector.broadcast %93 : i32 to vector<16x1xi32>
    %95 = arith.cmpi eq, %4, %94 : vector<16x1xi32>
    %cst_23 = arith.constant 0.000000e+00 : f32
    %96 = vector.shape_cast %95 : vector<16x1xi1> to vector<16x1xi1>
    %97 = vector.broadcast %96 : vector<16x1xi1> to vector<16x32xi1>
    %98 = vector.broadcast %cst_23 : f32 to vector<16x32xf32>
    %99 = arith.select %97, %0, %98 : vector<16x32xi1>, vector<16x32xf32>
    %cst_24 = arith.constant dense<0.000000e+00> : vector<32xf32>
    %100 = vector.multi_reduction <add>, %99, %cst_24 [0] : vector<16x32xf32> to vector<32xf32>
    %101 = vector.shape_cast %100 : vector<32xf32> to vector<1x32xf32>
    %c4_i32 = arith.constant 4 : i32
    %102 = vector.broadcast %c4_i32 : i32 to vector<8x1xi32>
    %103 = arith.cmpi eq, %19, %102 : vector<8x1xi32>
    %cst_25 = arith.constant 0.000000e+00 : f32
    %104 = vector.shape_cast %103 : vector<8x1xi1> to vector<8x1xi1>
    %105 = vector.broadcast %104 : vector<8x1xi1> to vector<8x32xi1>
    %106 = vector.shape_cast %101 : vector<1x32xf32> to vector<1x32xf32>
    %107 = vector.broadcast %106 : vector<1x32xf32> to vector<8x32xf32>
    %108 = vector.broadcast %cst_25 : f32 to vector<8x32xf32>
    %109 = arith.select %105, %107, %108 : vector<8x32xi1>, vector<8x32xf32>
    %110 = arith.addf %92, %109 : vector<8x32xf32>
    %c5 = arith.constant 5 : index
    %111 = memref.load %arg2[%c5] : memref<8xi32, #tpu.memory_space<smem>>
    %112 = vector.broadcast %111 : i32 to vector<16x1xi32>
    %113 = arith.cmpi eq, %4, %112 : vector<16x1xi32>
    %cst_26 = arith.constant 0.000000e+00 : f32
    %114 = vector.shape_cast %113 : vector<16x1xi1> to vector<16x1xi1>
    %115 = vector.broadcast %114 : vector<16x1xi1> to vector<16x32xi1>
    %116 = vector.broadcast %cst_26 : f32 to vector<16x32xf32>
    %117 = arith.select %115, %0, %116 : vector<16x32xi1>, vector<16x32xf32>
    %cst_27 = arith.constant dense<0.000000e+00> : vector<32xf32>
    %118 = vector.multi_reduction <add>, %117, %cst_27 [0] : vector<16x32xf32> to vector<32xf32>
    %119 = vector.shape_cast %118 : vector<32xf32> to vector<1x32xf32>
    %c5_i32 = arith.constant 5 : i32
    %120 = vector.broadcast %c5_i32 : i32 to vector<8x1xi32>
    %121 = arith.cmpi eq, %19, %120 : vector<8x1xi32>
    %cst_28 = arith.constant 0.000000e+00 : f32
    %122 = vector.shape_cast %121 : vector<8x1xi1> to vector<8x1xi1>
    %123 = vector.broadcast %122 : vector<8x1xi1> to vector<8x32xi1>
    %124 = vector.shape_cast %119 : vector<1x32xf32> to vector<1x32xf32>
    %125 = vector.broadcast %124 : vector<1x32xf32> to vector<8x32xf32>
    %126 = vector.broadcast %cst_28 : f32 to vector<8x32xf32>
    %127 = arith.select %123, %125, %126 : vector<8x32xi1>, vector<8x32xf32>
    %128 = arith.addf %110, %127 : vector<8x32xf32>
    %c6 = arith.constant 6 : index
    %129 = memref.load %arg2[%c6] : memref<8xi32, #tpu.memory_space<smem>>
    %130 = vector.broadcast %129 : i32 to vector<16x1xi32>
    %131 = arith.cmpi eq, %4, %130 : vector<16x1xi32>
    %cst_29 = arith.constant 0.000000e+00 : f32
    %132 = vector.shape_cast %131 : vector<16x1xi1> to vector<16x1xi1>
    %133 = vector.broadcast %132 : vector<16x1xi1> to vector<16x32xi1>
    %134 = vector.broadcast %cst_29 : f32 to vector<16x32xf32>
    %135 = arith.select %133, %0, %134 : vector<16x32xi1>, vector<16x32xf32>
    %cst_30 = arith.constant dense<0.000000e+00> : vector<32xf32>
    %136 = vector.multi_reduction <add>, %135, %cst_30 [0] : vector<16x32xf32> to vector<32xf32>
    %137 = vector.shape_cast %136 : vector<32xf32> to vector<1x32xf32>
    %c6_i32 = arith.constant 6 : i32
    %138 = vector.broadcast %c6_i32 : i32 to vector<8x1xi32>
    %139 = arith.cmpi eq, %19, %138 : vector<8x1xi32>
    %cst_31 = arith.constant 0.000000e+00 : f32
    %140 = vector.shape_cast %139 : vector<8x1xi1> to vector<8x1xi1>
    %141 = vector.broadcast %140 : vector<8x1xi1> to vector<8x32xi1>
    %142 = vector.shape_cast %137 : vector<1x32xf32> to vector<1x32xf32>
    %143 = vector.broadcast %142 : vector<1x32xf32> to vector<8x32xf32>
    %144 = vector.broadcast %cst_31 : f32 to vector<8x32xf32>
    %145 = arith.select %141, %143, %144 : vector<8x32xi1>, vector<8x32xf32>
    %146 = arith.addf %128, %145 : vector<8x32xf32>
    %c7 = arith.constant 7 : index
    %147 = memref.load %arg2[%c7] : memref<8xi32, #tpu.memory_space<smem>>
    %148 = vector.broadcast %147 : i32 to vector<16x1xi32>
    %149 = arith.cmpi eq, %4, %148 : vector<16x1xi32>
    %cst_32 = arith.constant 0.000000e+00 : f32
    %150 = vector.shape_cast %149 : vector<16x1xi1> to vector<16x1xi1>
    %151 = vector.broadcast %150 : vector<16x1xi1> to vector<16x32xi1>
    %152 = vector.broadcast %cst_32 : f32 to vector<16x32xf32>
    %153 = arith.select %151, %0, %152 : vector<16x32xi1>, vector<16x32xf32>
    %cst_33 = arith.constant dense<0.000000e+00> : vector<32xf32>
    %154 = vector.multi_reduction <add>, %153, %cst_33 [0] : vector<16x32xf32> to vector<32xf32>
    %155 = vector.shape_cast %154 : vector<32xf32> to vector<1x32xf32>
    %c7_i32 = arith.constant 7 : i32
    %156 = vector.broadcast %c7_i32 : i32 to vector<8x1xi32>
    %157 = arith.cmpi eq, %19, %156 : vector<8x1xi32>
    %cst_34 = arith.constant 0.000000e+00 : f32
    %158 = vector.shape_cast %157 : vector<8x1xi1> to vector<8x1xi1>
    %159 = vector.broadcast %158 : vector<8x1xi1> to vector<8x32xi1>
    %160 = vector.shape_cast %155 : vector<1x32xf32> to vector<1x32xf32>
    %161 = vector.broadcast %160 : vector<1x32xf32> to vector<8x32xf32>
    %162 = vector.broadcast %cst_34 : f32 to vector<8x32xf32>
    %163 = arith.select %159, %161, %162 : vector<8x32xi1>, vector<8x32xf32>
    %164 = arith.addf %146, %163 : vector<8x32xf32>
    %165 = vector.broadcast %12 : vector<1x32xf32> to vector<8x32xf32>
    %166 = arith.mulf %164, %165 : vector<8x32xf32>
    %cst_35 = arith.constant dense<0.000000e+00> : vector<8xf32>
    %167 = vector.multi_reduction <add>, %166, %cst_35 [1] : vector<8x32xf32> to vector<8xf32>
    %168 = vector.shape_cast %167 : vector<8xf32> to vector<8x1xf32>
    %169 = vector.broadcast %168 : vector<8x1xf32> to vector<8x4xf32>
    %170 = vector.broadcast %18 : vector<1x4xf32> to vector<8x4xf32>
    %171 = arith.subf %169, %170 : vector<8x4xf32>
    %172 = tpu.iota {dimensions = array<i32: 1>} : vector<8x4xi32>
    %cst_36 = arith.constant 0.000000e+00 : f32
    %173 = vector.broadcast %cst_36 : f32 to vector<8x4xf32>
    %174 = arith.cmpf ole, %171, %173 : vector<8x4xf32>
    %c4_i32_37 = arith.constant 4 : i32
    %175 = vector.broadcast %c4_i32_37 : i32 to vector<8x4xi32>
    %176 = arith.select %174, %172, %175 : vector<8x4xi1>, vector<8x4xi32>
    %cst_38 = arith.constant dense<2147483647> : vector<8xi32>
    %177 = vector.multi_reduction <minsi>, %176, %cst_38 [1] : vector<8x4xi32> to vector<8xi32>
    %178 = vector.shape_cast %177 : vector<8xi32> to vector<8x1xi32>
    %c1_i32_39 = arith.constant 1 : i32
    %179 = vector.broadcast %c1_i32_39 : i32 to vector<8x1xi32>
    %180 = arith.addi %178, %179 : vector<8x1xi32>
    %181 = arith.cmpi eq, %180, %2 : vector<8x1xi32>
    %182 = arith.extui %181 : vector<8x1xi1> to vector<8x1xi32>
    %183 = arith.sitofp %182 : vector<8x1xi32> to vector<8x1xf32>
    %184 = vector.shape_cast %183 : vector<8x1xf32> to vector<1x8x1xf32>
    %cst_40 = arith.constant dense<0.000000e+00> : vector<1xf32>
    %185 = vector.multi_reduction <add>, %184, %cst_40 [1, 2] : vector<1x8x1xf32> to vector<1xf32>
    %186 = vector.shape_cast %185 : vector<1xf32> to vector<1x1x1xf32>
    %187 = vector.extract %186[0, 0, 0] : f32 from vector<1x1x1xf32>
    %cst_41 = arith.constant 8.000000e+00 : f32
    %188 = arith.divf %187, %cst_41 : f32
    %189 = vector.broadcast %188 : f32 to vector<1x128xf32>
    %c0_42 = arith.constant 0 : index
    %c0_43 = arith.constant 0 : index
    %190 = vector.load %arg8[%c0_42, %c0_43] : memref<1x128xf32, #tpu.memory_space<vmem>>, vector<1x128xf32>
    tpu.vector_store %arg8[%c0_42, %c0_43], %189 {strides = array<i32>} : memref<1x128xf32, #tpu.memory_space<vmem>>, vector<1x128xf32>,
    %191 = vector.broadcast %2 : vector<8x1xi32> to vector<8x4xi32>
    %192 = arith.cmpi slt, %172, %191 : vector<8x4xi32>
    %cst_44 = arith.constant 1.000000e+00 : f32
    %cst_45 = arith.constant -1.000000e+00 : f32
    %193 = vector.broadcast %cst_44 : f32 to vector<8x4xf32>
    %194 = vector.broadcast %cst_45 : f32 to vector<8x4xf32>
    %195 = arith.select %192, %193, %194 : vector<8x4xi1>, vector<8x4xf32>
    %196 = arith.mulf %171, %195 : vector<8x4xf32>
    %cst_46 = arith.constant 0.000000e+00 : f32
    %197 = vector.broadcast %cst_46 : f32 to vector<8x4xf32>
    %198 = arith.cmpf ogt, %196, %197 : vector<8x4xf32>
    %199 = arith.sitofp %2 : vector<8x1xi32> to vector<8x1xf32>
    %cst_47 = arith.constant 0.000000e+00 : f32
    %200 = vector.broadcast %cst_47 : f32 to vector<8x4xf32>
    %201 = vector.shape_cast %199 : vector<8x1xf32> to vector<8x1xf32>
    %202 = vector.broadcast %201 : vector<8x1xf32> to vector<8x4xf32>
    %203 = arith.select %198, %200, %202 : vector<8x4xi1>, vector<8x4xf32>
    %cst_48 = arith.constant dense<0.000000e+00> : vector<4xf32>
    %204 = vector.multi_reduction <add>, %203, %cst_48 [0] : vector<8x4xf32> to vector<4xf32>
    %205 = vector.shape_cast %204 : vector<4xf32> to vector<1x4xf32>
    %cst_49 = arith.constant 8.000000e+00 : f32
    %206 = vector.broadcast %cst_49 : f32 to vector<1x4xf32>
    %207 = arith.divf %205, %206 : vector<1x4xf32>
    %cst_50 = arith.constant dense<0.000000e+00> : vector<8xf32>
    %208 = vector.multi_reduction <add>, %203, %cst_50 [1] : vector<8x4xf32> to vector<8xf32>
    %209 = vector.shape_cast %208 : vector<8xf32> to vector<8x1xf32>
    %210 = vector.broadcast %209 : vector<8x1xf32> to vector<8x32xf32>
    %211 = arith.mulf %210, %164 : vector<8x32xf32>
    %cst_51 = arith.constant dense<0.000000e+00> : vector<32xf32>
    %212 = vector.multi_reduction <add>, %211, %cst_51 [0] : vector<8x32xf32> to vector<32xf32>
    %213 = vector.shape_cast %212 : vector<32xf32> to vector<1x32xf32>
    %cst_52 = arith.constant 8.000000e+00 : f32
    %214 = vector.broadcast %cst_52 : f32 to vector<1x32xf32>
    %215 = arith.divf %213, %214 : vector<1x32xf32>
    %cst_53 = arith.constant 0.000000e+00 : f32
    %216 = vector.shape_cast %6 : vector<16x1xi1> to vector<16x1xi1>
    %217 = vector.broadcast %216 : vector<16x1xi1> to vector<16x32xi1>
    %218 = vector.shape_cast %215 : vector<1x32xf32> to vector<1x32xf32>
    %219 = vector.broadcast %218 : vector<1x32xf32> to vector<16x32xf32>
    %220 = vector.broadcast %cst_53 : f32 to vector<16x32xf32>
    %221 = arith.select %217, %219, %220 : vector<16x32xi1>, vector<16x32xf32>
    %222 = arith.addf %0, %221 : vector<16x32xf32>
    %c0_54 = arith.constant 0 : index
    %c0_55 = arith.constant 0 : index
    %223 = vector.load %arg6[%c0_54, %c0_55] : memref<16x32xf32, #tpu.memory_space<vmem>>, vector<16x32xf32>
    tpu.vector_store %arg6[%c0_54, %c0_55], %222 {strides = array<i32>} : memref<16x32xf32, #tpu.memory_space<vmem>>, vector<16x32xf32>,
    %cst_56 = arith.constant 0.000000e+00 : f32
    %224 = vector.shape_cast %6 : vector<16x1xi1> to vector<16x1xi1>
    %225 = vector.broadcast %224 : vector<16x1xi1> to vector<16x4xi1>
    %226 = vector.shape_cast %207 : vector<1x4xf32> to vector<1x4xf32>
    %227 = vector.broadcast %226 : vector<1x4xf32> to vector<16x4xf32>
    %228 = vector.broadcast %cst_56 : f32 to vector<16x4xf32>
    %229 = arith.select %225, %227, %228 : vector<16x4xi1>, vector<16x4xf32>
    %230 = arith.subf %1, %229 : vector<16x4xf32>
    %c0_57 = arith.constant 0 : index
    %c0_58 = arith.constant 0 : index
    %231 = vector.load %arg7[%c0_57, %c0_58] : memref<16x4xf32, #tpu.memory_space<vmem>>, vector<16x4xf32>
    tpu.vector_store %arg7[%c0_57, %c0_58], %230 {strides = array<i32>} : memref<16x4xf32, #tpu.memory_space<vmem>>, vector<16x4xf32>,
    return
  }
  func.func @transform_0(%arg0: i32, %arg1: memref<1xi32, #tpu.memory_space<smem>>, %arg2: memref<8xi32, #tpu.memory_space<smem>>) -> (i32, i32) {
    %c0_i32 = arith.constant 0 : i32
    %c0_i32_0 = arith.constant 0 : i32
    %c0_i32_1 = arith.constant 0 : i32
    return %c0_i32, %c0_i32_0 : i32, i32
  }
  func.func @transform_1(%arg0: i32, %arg1: memref<1xi32, #tpu.memory_space<smem>>, %arg2: memref<8xi32, #tpu.memory_space<smem>>) -> (i32, i32) {
    %c0_i32 = arith.constant 0 : i32
    %c0_i32_0 = arith.constant 0 : i32
    %c0_i32_1 = arith.constant 0 : i32
    return %c0_i32, %c0_i32_0 : i32, i32
  }
  func.func @transform_2(%arg0: i32, %arg1: memref<1xi32, #tpu.memory_space<smem>>, %arg2: memref<8xi32, #tpu.memory_space<smem>>) -> (i32, i32) {
    %c0_i32 = arith.constant 0 : i32
    %c0_i32_0 = arith.constant 0 : i32
    %c0_i32_1 = arith.constant 0 : i32
    return %c0_i32, %c0_i32_0 : i32, i32
  }
  func.func @transform_3(%arg0: i32, %arg1: memref<1xi32, #tpu.memory_space<smem>>, %arg2: memref<8xi32, #tpu.memory_space<smem>>) -> (i32, i32) {
    %c0_i32 = arith.constant 0 : i32
    %c0_i32_0 = arith.constant 0 : i32
    %c0_i32_1 = arith.constant 0 : i32
    return %c0_i32, %c0_i32_0 : i32, i32
  }
  func.func @transform_4(%arg0: i32, %arg1: memref<1xi32, #tpu.memory_space<smem>>, %arg2: memref<8xi32, #tpu.memory_space<smem>>) -> (i32, i32) {
    %c0_i32 = arith.constant 0 : i32
    %c0_i32_0 = arith.constant 0 : i32
    %c0_i32_1 = arith.constant 0 : i32
    return %c0_i32, %c0_i32_0 : i32, i32
  }
  func.func @transform_5(%arg0: i32, %arg1: memref<1xi32, #tpu.memory_space<smem>>, %arg2: memref<8xi32, #tpu.memory_space<smem>>) -> (i32, i32) {
    %c0_i32 = arith.constant 0 : i32
    %c0_i32_0 = arith.constant 0 : i32
    %c0_i32_1 = arith.constant 0 : i32
    return %c0_i32, %c0_i32_0 : i32, i32
  }
}

</mosaic_0001>

<bundles_post_ra>
// kernel: _prank_forward_impl.1
= control target key start
LH: loop header
LB: loop body
LE: loop exit
PB: predicated region body
PF: predicated region fallthrough
CT: control target
= control target key end

     0   :  { %s660_s0 = inlined_call_operand.<no memory space> [shape: s32[1], index: 0, kind: input, shape index: {}]   ;;  %s661_s1 = inlined_call_operand.vmem [shape: s32[8], index: 1, kind: input, shape index: {}]   ;;  %s662_s2 = inlined_call_operand.vmem [shape: f32[16,32], index: 2, kind: input, shape index: {}, may-alias: {2,5}]   ;;  %s663_s3 = inlined_call_operand.vmem [shape: f32[16,4], index: 3, kind: input, shape index: {}, may-alias: {3,6}]   ;;  %s664_s4 = inlined_call_operand.vmem [shape: s32[8,1], index: 4, kind: input, shape index: {}]   ;;  %s665_s5 = inlined_call_operand.vmem [shape: f32[16,32], index: 5, kind: output, shape index: {0}, may-alias: {2,5}]   ;;  %s666_s6 = inlined_call_operand.vmem [shape: f32[16,4], index: 6, kind: output, shape index: {1}, may-alias: {3,6}]   ;;  %s667_s7 = inlined_call_operand.hbm [shape: f32[1,128], index: 7, kind: output, shape index: {2}]  }
   0x1   :  { %s14_s26 = sshll.u32 %s661_s1, 4  ;;  %s15_s26 = int_to_ptr.vmem [resolvable:$true] %s14_s26 }
   0x2   :  { %s388_s27 = scalar_lea.vmem %s15_s26, 16  ;;  %p393_p1 = scmp.lt.s32.totalorder %s15_s26, %s15_s26 }
   0x3   :  { %p389_p0 = scmp.ne.s32.totalorder %s15_s26, %s388_s27  ;;  %p394_p2 = scmp.lt.s32.totalorder %s388_s27, %s388_s27 }
   0x5   :  { %p395_p3 = por %p394_p2, %p393_p1 }
   0x7   :  { %p396_p4 = pnand %p395_p3, %p389_p0 }
   0x9   :  { %399 = shalt.err (!%p396_p4)  }
   0xa   :  { %s424_s28 = smov [#allocation4]  }
   0xb   :  { %17 = dma.vmem_to_smem %s15_s26, 16, %s424_s28, [#allocation2] }
   0xc   :  { %420 = dma.done.wait [#allocation2], 16 }
   0xd   :  { %421 = vsyncadd [#allocation2], 4294967280 }
   0xe   :  { %19 = sfence }
   0xf   :  { %v33_v0 = vlaneseq  ;;  %s67_s29 = sld [smem:[#allocation4]] }
  0x10   :  { %s371_s30 = sld [smem:[#allocation4 + $0x1]] }
  0x11   :  { %20 = vsyncpa [#allocation6], 0  ;;  %v473_v1 = vshrl.u32 %v33_v0, 7  ;;  %s475_s1 = sld [smem:[#allocation4 + $0x2]]  ;;  %v36_v2 = vstv %s660_s0  ;;  %v486_v4 = vld [vmem:[%s662_s2] sm:$0xff]  ;;  %v491_v5 = vld [vmem:[%s662_s2 + $0x8] sm:$0xff] }
  0x12   :  { %s493_s14 = sld [smem:[#allocation4 + $0x3]]  ;;  %vm45_vm1 = vcmask 261120   ;;  %s428_s28 = smov [#allocation5]  }
  0x13   :  { %v481_v3 = vadd.s32 8, %v473_v1  ;;  %vm496_vm0 = vcmp.eq.s32.totalorder %v473_v1, %v36_v2  ;;  %s516_s0 = sld [smem:[#allocation4 + $0x4]]  ;;  %vm86_vm9 = vcmp.eq.s32.totalorder %v473_v1, 0  ;;  %vm110_vm12 = vcmp.eq.s32.totalorder %v473_v1, 1 }
  0x14   :  { %v43_v12 = vsel %vm496_vm0, %v486_v4, 0.0  ;;  %s536_s2 = sld [smem:[#allocation4 + $0x5]]  ;;  %vm134_vm15 = vcmp.eq.s32.totalorder %v473_v1, 2 }
  0x15   :  { %v68_v7 = vstv %s67_s29  ;;  %vm503_vm4 = vcmp.eq.s32.totalorder %v481_v3, %v36_v2  ;;  %v46_v25 = vsel %vm45_vm1, %v43_v12, 0.0  ;;  %s541_s15 = sld [smem:[#allocation4 + $0x6]]  ;;  %s359_s29 = sshll.u32 %s428_s28, 4  ;;  %s360_s29 = int_to_ptr.vmem [resolvable:$true] %s359_s29 }
  0x16   :  { %vm69_vm2 = vcmp.eq.s32.totalorder %v473_v1, %v68_v7  ;;  %vm70_vm3 = vcmp.eq.s32.totalorder %v481_v3, %v68_v7  ;;  %v92_v8 = vstv %s371_s30  ;;  %v44_v19 = vsel %vm503_vm4, %v491_v5, 0.0  ;;  %s558_s16 = sld [smem:[#allocation4 + $0x7]]  ;;  %s400_s8 = scalar_lea.vmem %s360_s29, 16 }
  0x17   :  { %v75_v10 = vsel %vm69_vm2, %v486_v4, 0.0  ;;  %v76_v11 = vsel %vm70_vm3, %v491_v5, 0.0  ;;  %vm93_vm5 = vcmp.eq.s32.totalorder %v473_v1, %v92_v8  ;;  %vm94_vm6 = vcmp.eq.s32.totalorder %v481_v3, %v92_v8  ;;  %p401_p5 = scmp.ne.s32.totalorder %s360_s29, %s400_s8  ;;  %s404_s9 = scalar_lea.vmem %s360_s29, 32 }
  0x18   :  { %v77_v13 = vsel %vm45_vm1, %v75_v10, 0.0  ;;  %v78_v14 = vsel %vm45_vm1, %v76_v11, 0.0  ;;  %v99_v16 = vsel %vm93_vm5, %v486_v4, 0.0  ;;  %v100_v17 = vsel %vm94_vm6, %v491_v5, 0.0  ;;  %p405_p6 = scmp.lt.s32.totalorder %s360_s29, %s360_s29  ;;  %p406_p7 = scmp.lt.s32.totalorder %s404_s9, %s400_s8 }
  0x19   :  { %v79_v15 = vadd.f32 %v78_v14, %v77_v13  ;;  %v116_v18 = vstv %s475_s1  ;;  %v101_v20 = vsel %vm45_vm1, %v99_v16, 0.0  ;;  %v102_v21 = vsel %vm45_vm1, %v100_v17, 0.0 }
  0x1a   :  { %vm117_vm7 = vcmp.eq.s32.totalorder %v473_v1, %v116_v18  ;;  %v103_v23 = vadd.f32 %v102_v21, %v101_v20  ;;  %vm118_vm8 = vcmp.eq.s32.totalorder %v481_v3, %v116_v18  ;;  %v140_v28 = vstv %s493_s14  ;;  %p407_p8 = por %p406_p7, %p405_p6 }
  0x1b   :  { %v80_v22 = vrot.slane %v79_v15, 4  ;;  %v123_v24 = vsel %vm117_vm7, %v486_v4, 0.0  ;;  %v124_v26 = vsel %vm118_vm8, %v491_v5, 0.0  ;;  %vm141_vm10 = vcmp.eq.s32.totalorder %v473_v1, %v140_v28 }
  0x1c   :  { %v125_v27 = vsel %vm45_vm1, %v123_v24, 0.0  ;;  %v104_v30 = vrot.slane %v103_v23, 4  ;;  %v126_v31 = vsel %vm45_vm1, %v124_v26, 0.0  ;;  %v47_v32 = vsel %vm45_vm1, %v44_v19, 0.0  ;;  %p408_p9 = pnand %p407_p8, %p401_p5 }
  0x1d   :  { %v81_v29 = vadd.f32 %v80_v22, %v79_v15  ;;  %v127_v33 = vadd.f32 %v126_v31, %v125_v27  ;;  %vm142_vm11 = vcmp.eq.s32.totalorder %v481_v3, %v140_v28  ;;  %v147_v34 = vsel %vm141_vm10, %v486_v4, 0.0 }
  0x1e   :  { %v105_v36 = vadd.f32 %v104_v30, %v103_v23  ;;  %v148_v37 = vsel %vm142_vm11, %v491_v5, 0.0  ;;  %v149_v38 = vsel %vm45_vm1, %v147_v34, 0.0  ;;  %v164_v41 = vstv %s516_s0 }
  0x1f   :  { %v82_v35 = vrot.slane %v81_v29, 2  ;;  %v128_v39 = vrot.slane %v127_v33, 4  ;;  %v150_v40 = vsel %vm45_vm1, %v148_v37, 0.0  ;;  %vm165_vm13 = vcmp.eq.s32.totalorder %v473_v1, %v164_v41 }
  0x20   :  { %v106_v43 = vrot.slane %v105_v36, 2  ;;  %v151_v44 = vadd.f32 %v150_v40, %v149_v38  ;;  %v48_v45 = vadd.f32 %v47_v32, %v46_v25  ;;  %vm166_vm14 = vcmp.eq.s32.totalorder %v481_v3, %v164_v41 }
  0x21   :  { %v83_v42 = vadd.f32 %v82_v35, %v81_v29  ;;  %v129_v46 = vadd.f32 %v128_v39, %v127_v33  ;;  %v171_v47 = vsel %vm165_vm13, %v486_v4, 0.0  ;;  %v172_v51 = vsel %vm166_vm14, %v491_v5, 0.0 }
  0x22   :  { %v107_v49 = vadd.f32 %v106_v43, %v105_v36  ;;  %v152_v50 = vrot.slane %v151_v44, 4  ;;  %v173_v53 = vsel %vm45_vm1, %v171_v47, 0.0  ;;  %v174_v54 = vsel %vm45_vm1, %v172_v51, 0.0 }
  0x23   :  { %v84_v48 = vrot.slane %v83_v42, 1  ;;  %v130_v52 = vrot.slane %v129_v46, 2  ;;  %vm158_vm2 = vcmp.eq.s32.totalorder %v473_v1, 3  ;;  %v175_v58 = vadd.f32 %v174_v54, %v173_v53 }
  0x24   :  { %v108_v56 = vrot.slane %v107_v49, 1  ;;  %v153_v57 = vadd.f32 %v152_v50, %v151_v44  ;;  %v49_v59 = vrot.slane %v48_v45, 4  ;;  %v188_v61 = vstv %s536_s2 }
  0x25   :  { %v85_v55 = vadd.f32 %v84_v48, %v83_v42  ;;  %v131_v60 = vadd.f32 %v130_v52, %v129_v46  ;;  %v212_v62 = vstv %s541_s15  ;;  %v176_v8 = vrot.slane %v175_v58, 4 }
  0x26   :  { %v109_v2 = vadd.f32 %v108_v56, %v107_v49  ;;  %v154_v7 = vrot.slane %v153_v57, 2  ;;  %vm189_vm3 = vcmp.eq.s32.totalorder %v473_v1, %v188_v61  ;;  %vm190_vm5 = vcmp.eq.s32.totalorder %v481_v3, %v188_v61 }
  0x27   :  { %v89_v63 = vsel %vm86_vm9, %v85_v55, 0.0  ;;  %v132_v10 = vrot.slane %v131_v60, 1  ;;  %vm565_vm6 = vcmp.eq.s32.totalorder %v473_v1, %v212_v62  ;;  %v177_v14 = vadd.f32 %v176_v8, %v175_v58 }
  0x28   :  { %v113_v12 = vsel %vm110_vm12, %v109_v2, 0.0  ;;  %v155_v13 = vadd.f32 %v154_v7, %v153_v57  ;;  %v195_v15 = vsel %vm189_vm3, %v486_v4, 0.0  ;;  %v196_v18 = vsel %vm190_vm5, %v491_v5, 0.0 }
  0x29   :  { %v114_v16 = vadd.f32 %v113_v12, %v89_v63  ;;  %v133_v17 = vadd.f32 %v132_v10, %v131_v60  ;;  %v197_v19 = vsel %vm45_vm1, %v195_v15, 0.0  ;;  %v178_v21 = vrot.slane %v177_v14, 2 }
  0x2a   :  { %v156_v20 = vrot.slane %v155_v13, 1  ;;  %v198_v22 = vsel %vm45_vm1, %v196_v18, 0.0  ;;  %vm214_vm7 = vcmp.eq.s32.totalorder %v481_v3, %v212_v62  ;;  %v219_v25 = vsel %vm565_vm6, %v486_v4, 0.0  ;;  %v606_v18 = vld [vmem:[%s663_s3] sm:$0xff] }
  0x2b   :  { %v137_v23 = vsel %vm134_vm15, %v133_v17, 0.0  ;;  %v199_v24 = vadd.f32 %v198_v22, %v197_v19  ;;  %v220_v26 = vsel %vm214_vm7, %v491_v5, 0.0  ;;  %v179_v28 = vadd.f32 %v178_v21, %v177_v14  ;;  %v611_v19 = vld [vmem:[%s663_s3 + $0x8] sm:$0xff] }
  0x2c   :  { %v157_v27 = vadd.f32 %v156_v20, %v155_v13  ;;  %vm182_vm8 = vcmp.eq.s32.totalorder %v473_v1, 4  ;;  %v221_v29 = vsel %vm45_vm1, %v219_v25, 0.0  ;;  %v50_v30 = vadd.f32 %v49_v59, %v48_v45 }
  0x2d   :  { %v200_v31 = vrot.slane %v199_v24, 4  ;;  %v222_v32 = vsel %vm45_vm1, %v220_v26, 0.0  ;;  %v236_v33 = vstv %s558_s16  ;;  %v138_v34 = vadd.f32 %v137_v23, %v114_v16 }
  0x2e   :  { %v180_v35 = vrot.slane %v179_v28, 1  ;;  %v223_v36 = vadd.f32 %v222_v32, %v221_v29  ;;  %vm237_vm9 = vcmp.eq.s32.totalorder %v473_v1, %v236_v33  ;;  %v161_v37 = vsel %vm158_vm2, %v157_v27, 0.0 }
  0x2f   :  { %v201_v38 = vadd.f32 %v200_v31, %v199_v24  ;;  %vm238_vm10 = vcmp.eq.s32.totalorder %v481_v3, %v236_v33  ;;  %v243_v39 = vsel %vm237_vm9, %v486_v4, 0.0  ;;  %v162_v46 = vadd.f32 %v161_v37, %v138_v34 }
  0x30   :  { %v181_v40 = vadd.f32 %v180_v35, %v179_v28  ;;  %v224_v41 = vrot.slane %v223_v36, 4  ;;  %v244_v42 = vsel %vm238_vm10, %v491_v5, 0.0  ;;  %v245_v43 = vsel %vm45_vm1, %v243_v39, 0.0 }
  0x31   :  { %v202_v44 = vrot.slane %v201_v38, 2  ;;  %v246_v45 = vsel %vm45_vm1, %v244_v42, 0.0  ;;  %v51_v49 = vrot.slane %v50_v30, 2  ;;  %vm206_vm11 = vcmp.eq.s32.totalorder %v473_v1, 5 }
  0x32   :  { %v225_v47 = vadd.f32 %v224_v41, %v223_v36  ;;  %v247_v48 = vadd.f32 %v246_v45, %v245_v43  ;;  %v185_v50 = vsel %vm182_vm8, %v181_v40, 0.0  ;;  %vm230_vm12 = vcmp.eq.s32.totalorder %v473_v1, 6 }
  0x33   :  { %v203_v51 = vadd.f32 %v202_v44, %v201_v38  ;;  %v186_v54 = vadd.f32 %v185_v50, %v162_v46  ;;  %v52_v57 = vadd.f32 %v51_v49, %v50_v30  ;;  %vm254_vm13 = vcmp.eq.s32.totalorder %v473_v1, 7  ;;  %v31_v38 = vld [vmem:[%s664_s4] sm:$0xff] }
  0x34   :  { %v226_v3 = vrot.slane %v225_v47, 2  ;;  %v248_v52 = vrot.slane %v247_v48, 4  ;;  %v55_v1 = vsel %vm496_vm0, %v606_v18, 0.0  ;;  %v56_v20 = vsel %vm503_vm4, %v611_v19, 0.0 }
  0x35   :  { %v204_v53 = vrot.slane %v203_v51, 1  ;;  %v53_v7 = vrot.slane %v52_v57, 1  ;;  %vm57_vm14 = vcmask 31744   ;;  %v265_v30 = vand.u32 127, %v33_v0 }
  0x36   :  { %v227_v55 = vadd.f32 %v226_v3, %v225_v47  ;;  %v249_v56 = vadd.f32 %v248_v52, %v247_v48  ;;  %v58_v21 = vsel %vm57_vm14, %v55_v1, 0.0  ;;  %v59_v22 = vsel %vm57_vm14, %v56_v20, 0.0 }
  0x37   :  { %v205_v58 = vadd.f32 %v204_v53, %v203_v51  ;;  %v54_v13 = vadd.f32 %v53_v7, %v52_v57  ;;  %v60_v23 = vadd.f32 %v59_v22, %v58_v21  ;;  %v425_v37 = vmov 0  }
  0x38   :  { %v228_v59 = vrot.slane %v227_v55, 1  ;;  %v250_v60 = vrot.slane %v249_v56, 2  ;;  %386 = vset.pattern.permute.xlu1 %v425_v37  ;;  %387 = vset.pattern.permute.xlu0 %v425_v37  ;;  %v310_v39 = vcvt.s32.f32 %v31_v38  ;;  %v426_v50 = vmov -1.0  }
  0x39   :  { %v209_v61 = vsel %vm206_vm11, %v205_v58, 0.0  ;;  %v61_v24 = vrot.slane %v60_v23, 4  ;;  %vm287_vm5 = vcmask 7168   ;;  %v427_v53 = vmov 0.0  }
  0x3a   :  { %v210_v62 = vadd.f32 %v209_v61, %v186_v54  ;;  %v229_v63 = vadd.f32 %v228_v59, %v227_v55  ;;  %v251_v2 = vadd.f32 %v250_v60, %v249_v56 }
  0x3b   :  { %v62_v25 = vadd.f32 %v61_v24, %v60_v23 }
  0x3c   :  { %v233_v8 = vsel %vm230_vm12, %v229_v63, 0.0  ;;  %v252_v10 = vrot.slane %v251_v2, 1 }
  0x3d   :  { %v234_v11 = vadd.f32 %v233_v8, %v210_v62  ;;  %v63_v26 = vrot.slane %v62_v25, 2 }
  0x3e   :  { %v253_v12 = vadd.f32 %v252_v10, %v251_v2 }
  0x3f   :  { %v64_v27 = vadd.f32 %v63_v26, %v62_v25 }
  0x40   :  { %v257_v14 = vsel %vm254_vm13, %v253_v12, 0.0 }
  0x41   :  { %v599_v15 = vadd.f32 %v257_v14, %v234_v11  ;;  %v65_v28 = vrot.slane %v64_v27, 1 }
  0x43   :  { %v259_v16 = vmul.f32 %v599_v15, %v54_v13  ;;  %v66_v29 = vadd.f32 %v65_v28, %v64_v27 }
  0x45   :  { %v260_v17 = vsel %vm45_vm1, %v259_v16, 0.0 }
  0x46   :  { %261 = vadd.xlane.f32.xlu0 %v260_v17 }
  0xcf   :  { %v262_v31 = vpop.xlane.xlu0 %261 }
  0xd0   :  { %v263_v32 = vsub.f32 %v262_v31, %v66_v29 }
  0xd2   :  { %vm266_vm15 = vcmp.le.f32.partialorder %v263_v32, 0.0 }
  0xd3   :  { %v267_v33 = vsel %vm266_vm15, %v265_v30, 4 }
  0xd4   :  { %v268_v34 = vsel %vm57_vm14, %v267_v33, 2147483647 }
  0xd5   :  { %v270_v35 = vshra.s32 %v268_v34, 16  ;;  %v269_v40 = vand.u32 65535, %v268_v34 }
  0xd7   :  { %v272_v36 = vcvt.s32.f32 %v270_v35  ;;  %v271_v41 = vcvt.s32.f32 %v269_v40 }
  0xd9   :  { %273 = vmin.xlane.f32.xlu0 %v272_v36 }
  0xef   :  { %313 = vperm.xlu0 %387, %v310_v39  }
 0x162   :  { %v274_v0 = vpop.xlane.xlu0 %273 }
 0x163   :  { %vm275_vm2 = vcmp.eq.f32.partialorder %v272_v36, %v274_v0  ;;  %v280_v43 = vcvt.f32.s32 %v274_v0 }
 0x164   :  { %v276_v42 = vsel %vm275_vm2, %v271_v41, inf }
 0x165   :  { %277 = vmin.xlane.f32.xlu1 %v276_v42  ;;  %v281_v45 = vshll.u32 %v280_v43, 16 }
 0x16a   :  { %v314_v3 = vpop.permute.xlu0 %313 }
 0x176   :  { %304 = vperm.xlu1 %386, %v31_v38  }
 0x1ee   :  { %v278_v44 = vpop.xlane.xlu1 %277 }
 0x1ef   :  { %v279_v46 = vcvt.f32.s32 %v278_v44 }
 0x1f1   :  { %v282_v47 = vadd.s32 %v281_v45, %v279_v46 }
 0x1f2   :  { %v305_v48 = vpop.permute.xlu1 %304 }
 0x1f3   :  { %v283_v49 = vadd.s32 1, %v282_v47  ;;  %vm306_vm3 = vcmp.lt.s32.totalorder %v265_v30, %v305_v48 }
 0x1f4   :  { %v307_v51 = vsel %vm306_vm3, 1.0, %v426_v50 }
 0x1f5   :  { %v308_v52 = vmul.f32 %v307_v51, %v263_v32  ;;  %vm284_vm6 = vcmp.eq.s32.totalorder %v283_v49, %v31_v38 }
 0x1f6   :  { %v378_v54 = vsel %vm284_vm6, 1.0, %v427_v53 }
 0x1f7   :  { %vm309_vm7 = vcmp.gt.f32.partialorder %v308_v52, 0.0  ;;  %v288_v55 = vsel %vm287_vm5, %v378_v54, 0.0 }
 0x1f8   :  { %v316_v56 = vsel %vm309_vm7, 0.0, %v314_v3  ;;  %289 = vadd.xlane.f32.xlu1 %v288_v55 }
 0x1f9   :  { %v317_v57 = vsel %vm57_vm14, %v316_v56, 0.0 }
 0x1fa   :  { %v318_v58 = vrot.slane %v317_v57, 4  ;;  %326 = vadd.xlane.f32.xlu0 %v317_v57 }
 0x1fc   :  { %v319_v59 = vadd.f32 %v318_v58, %v317_v57 }
 0x1fe   :  { %v320_v60 = vrot.slane %v319_v59, 2 }
 0x200   :  { %v321_v61 = vadd.f32 %v320_v60, %v319_v59 }
 0x202   :  { %v322_v62 = vrot.slane %v321_v61, 1 }
 0x204   :  { %v323_v63 = vadd.f32 %v322_v62, %v321_v61 }
 0x206   :  { %v325_v2 = vmul.f32 0.125, %v323_v63 }
 0x208   :  { %v343_v7 = vsel %vm496_vm0, %v325_v2, 0.0  ;;  %v344_v8 = vsel %vm503_vm4, %v325_v2, 0.0 }
 0x209   :  { %v345_v10 = vsub.f32 %v606_v18, %v343_v7  ;;  %v346_v11 = vsub.f32 %v611_v19, %v344_v8 }
 0x20b   :  { %347 = vst.msk [vmem:[%s666_s6] sm:$0xff] %vm57_vm14, %v345_v10  ;;  %348 = vst.msk [vmem:[%s666_s6 + $0x8] sm:$0xff] %vm57_vm14, %v346_v11 }
 0x281   :  { %v290_v12 = vpop.xlane.xlu1 %289 }
 0x282   :  { %v291_v13 = vrot.slane %v290_v12, 4 }
 0x283   :  { %v327_v14 = vpop.xlane.xlu0 %326 }
 0x284   :  { %v292_v16 = vadd.f32 %v291_v13, %v290_v12  ;;  %v328_v17 = vmul.f32 %v327_v14, %v599_v15 }
 0x286   :  { %v293_v1 = vrot.slane %v292_v16, 2  ;;  %v329_v18 = vsel %vm45_vm1, %v328_v17, 0.0 }
 0x287   :  { %v330_v19 = vrot.slane %v329_v18, 4 }
 0x288   :  { %v294_v20 = vadd.f32 %v293_v1, %v292_v16 }
 0x289   :  { %v331_v21 = vadd.f32 %v330_v19, %v329_v18 }
 0x28a   :  { %v295_v22 = vrot.slane %v294_v20, 1 }
 0x28b   :  { %v332_v23 = vrot.slane %v331_v21, 2 }
 0x28c   :  { %v296_v24 = vadd.f32 %v295_v22, %v294_v20 }
 0x28d   :  { %v333_v25 = vadd.f32 %v332_v23, %v331_v21 }
 0x28e   :  { %379 = vpush %v296_v24 }
 0x28f   :  { %v334_v26 = vrot.slane %v333_v25, 1 }
 0x291   :  { %v335_v27 = vadd.f32 %v334_v26, %v333_v25 }
 0x293   :  { %v336_v28 = vmul.f32 0.125, %v335_v27 }
 0x295   :  { %v337_v29 = vsel %vm496_vm0, %v336_v28, 0.0  ;;  %v338_v15 = vsel %vm503_vm4, %v336_v28, 0.0 }
 0x296   :  { %v339_v30 = vadd.f32 %v337_v29, %v486_v4  ;;  %v340_v31 = vadd.f32 %v338_v15, %v491_v5 }
 0x298   :  { %341 = vst.msk [vmem:[%s665_s5] sm:$0xff] %vm45_vm1, %v339_v30  ;;  %342 = vst.msk [vmem:[%s665_s5 + $0x8] sm:$0xff] %vm45_vm1, %v340_v31 }
 0x2bf   :  { %s380_s30 = spop %379 }
 0x2c0   :  { %s300_s1 = smul.f32 0.125, %s380_s30 }
 0x2c2   :  { %v301_v6 = vstv %s300_s1 }
 0x2c3   :  { %302 = vst [vmem:[#allocation5] sm:$0x1] %v301_v6 }
 0x2c4   :  { %411 = shalt.err (!%p408_p9)
}
 0x2c5   :  { %362 = dma.vmem_to_hbm [thread:$0]  %s360_s29, 16, %s667_s7, [#allocation6]  }
 0x2c6   :  { %422 = dma.done.wait [#allocation6], 16  }
 0x2c7   :  { %423 = vsyncadd [#allocation6], 4294967280 }
 0x2c8   :  { %370 = vsyncpa [#allocation6], 1 }

</bundles_post_ra>
